<compile_context>
chip_gen: v5e
topology: v5e:2x2
jax: 0.10.0
libtpu: 0.0.40
codegen_flags: <defaults>
</compile_context>

<pallas_src>
import jax
import jax.numpy as jnp
from jax.experimental import pallas as pl
from jax.experimental.pallas import tpu as pltpu

IP_SIZE = 200
HID1 = 64
HID2 = 32
OP_SIZE = 1


def _round_up(n, m):
    return ((n + m - 1) // m) * m


def _sigmoid(x):
    # exp and reciprocal both lower to the EUP slot (free alongside VALU work).
    # Stable two-sided form: sigmoid(-|x|) = 1 - sigmoid(|x|).
    z = jnp.exp(-jnp.abs(x))
    p = pl.reciprocal(1.0 + z, approx=True)  # sigmoid(|x|)
    return jnp.where(x >= 0, p, 1.0 - p)


def mlp_kernel(x_ref, w1_ref, b1_ref, w2_ref, b2_ref, w3_ref, b3_ref, o_ref):
    # Cast MXU operands to bf16 in-kernel: avoids a separate XLA cast op (an
    # extra read+write of x in HBM).  Accumulation stays f32; bias + sigmoid f32.
    x = x_ref[...].astype(jnp.bfloat16)
    w1 = w1_ref[...].astype(jnp.bfloat16)
    w2 = w2_ref[...].astype(jnp.bfloat16)

    # Layer 1: (tile_b, 200) bf16 @ (200, 64) bf16 -> f32 accumulate.
    h1 = _sigmoid(jnp.dot(x, w1, preferred_element_type=jnp.float32) + b1_ref[...])
    # Layer 2: (tile_b, 64) bf16 @ (64, 32) bf16 -> f32 accumulate.
    h2 = _sigmoid(
        jnp.dot(h1.astype(jnp.bfloat16), w2, preferred_element_type=jnp.float32)
        + b2_ref[...]
    )
    # Layer 3 (32 -> 1): elementwise mul + lane reduce instead of a 1-wide MXU pass.
    z3 = jnp.sum(h2 * w3_ref[...], axis=-1, keepdims=True) + b3_ref[...]
    o_ref[...] = _sigmoid(z3).astype(o_ref.dtype)


def custom_network_forward(x, params, *, tile_b=1024):
    """x: [B, 200] float32 -> [B, 1] float32.  Works for any B (ragged last tile)."""
    w1, b1, w2, b2, w3, b3 = params
    B = x.shape[0]

    # Keep the tile a multiple of 8 sublanes; don't over-allocate for tiny batches.
    tile_b = max(8, (tile_b // 8) * 8)
    tile_b = min(tile_b, _round_up(B, 8))
    grid = (pl.cdiv(B, tile_b),)

    # Layer-3 weights as a (1, 32) row for the lane-reduce; stays f32.
    w3_row = w3.reshape(1, HID2).astype(jnp.float32)

    full = lambda shape: pl.BlockSpec(shape, lambda i: (0, 0))

    out = pl.pallas_call(
        mlp_kernel,
        out_shape=jax.ShapeDtypeStruct((B, OP_SIZE), jnp.float32),
        grid_spec=pl.GridSpec(
            grid=grid,
            in_specs=[
                pl.BlockSpec((tile_b, IP_SIZE), lambda i: (i, 0)),  # x tile
                full((IP_SIZE, HID1)),   # w1
                full((1, HID1)),         # b1
                full((HID1, HID2)),      # w2
                full((1, HID2)),         # b2
                full((1, HID2)),         # w3 (as a row)
                full((1, OP_SIZE)),      # b3
            ],
            out_specs=pl.BlockSpec((tile_b, OP_SIZE), lambda i: (i, 0)),
        ),
        compiler_params=pltpu.CompilerParams(
            dimension_semantics=("parallel",),
        ),
    )(x.astype(jnp.float32), w1, b1, w2, b2, w3_row, b3)

    return out


def init_params(key):
    """Deterministic init mimicking nn.Linear: U(-1/sqrt(fan_in), 1/sqrt(fan_in))."""
    sizes = [IP_SIZE, HID1, HID2, OP_SIZE]
    params = []
    keys = jax.random.split(key, 2 * (len(sizes) - 1))
    for li in range(len(sizes) - 1):
        fan_in, fan_out = sizes[li], sizes[li + 1]
        bound = 1.0 / jnp.sqrt(jnp.float32(fan_in))
        w = jax.random.uniform(
            keys[2 * li], (fan_in, fan_out), jnp.float32, -bound, bound
        )
        b = jax.random.uniform(
            keys[2 * li + 1], (1, fan_out), jnp.float32, -bound, bound
        )
        params += [w, b]
    return tuple(params)


def reference_forward(x, params):
    w1, b1, w2, b2, w3, b3 = params
    h = jax.nn.sigmoid(x @ w1 + b1)
    h = jax.nn.sigmoid(h @ w2 + b2)
    return jax.nn.sigmoid(h @ w3 + b3)


# TODO(synk): training-side methods (compute_loss / bce_logits / obj_fun / obj_grad /
# conf / conJ) are host-side optimization plumbing, not part of the forward pass,
# and are not ported.

if __name__ == "__main__":
    key = jax.random.PRNGKey(0)
    pkey, xkey, xkey2, xkey3 = jax.random.split(key, 4)
    params = init_params(pkey)

    # Small batch consistent with the module (features = 200).
    B = 16
    x = jax.random.normal(xkey, (B, IP_SIZE), jnp.float32)
    out = jax.block_until_ready(custom_network_forward(x, params))
    ref = reference_forward(x, params)
    assert out.shape == (B, OP_SIZE)
    # bf16 matmuls + approx reciprocal -> compare at a matching tolerance.
    assert jnp.allclose(out, ref, atol=1e-2, rtol=1e-2), "mismatch vs reference"

    # Ragged batch (B not a multiple of 8) -> masked boundary block, no padding copy.
    B2 = 20
    x2 = jax.random.normal(xkey2, (B2, IP_SIZE), jnp.float32)
    out2 = jax.block_until_ready(custom_network_forward(x2, params))
    ref2 = reference_forward(x2, params)
    assert out2.shape == (B2, OP_SIZE)
    assert jnp.allclose(out2, ref2, atol=1e-2, rtol=1e-2), "mismatch vs reference (ragged)"

    # Multi-step grid + ragged last tile.
    B3 = 200
    x3 = jax.random.normal(xkey3, (B3, IP_SIZE), jnp.float32)
    out3 = jax.block_until_ready(custom_network_forward(x3, params, tile_b=64))
    ref3 = reference_forward(x3, params)
    assert out3.shape == (B3, OP_SIZE)
    assert jnp.allclose(out3, ref3, atol=1e-2, rtol=1e-2), "mismatch vs reference (grid)"

    print("KERNEL_OK")
</pallas_src>

<mosaic_0001>
module attributes {stable_mosaic.version = 11 : i64} {
  func.func @mlp_kernel(%arg0: i32, %arg1: memref<16x200xf32, #tpu.memory_space<vmem>>, %arg2: memref<200x64xf32, #tpu.memory_space<vmem>>, %arg3: memref<1x64xf32, #tpu.memory_space<vmem>>, %arg4: memref<64x32xf32, #tpu.memory_space<vmem>>, %arg5: memref<1x32xf32, #tpu.memory_space<vmem>>, %arg6: memref<1x32xf32, #tpu.memory_space<vmem>>, %arg7: memref<1x1xf32, #tpu.memory_space<vmem>>, %arg8: memref<16x1xf32, #tpu.memory_space<vmem>>) attributes {dimension_semantics = [#tpu.dimension_semantics<parallel>], iteration_bounds = array<i64: 1>, scalar_prefetch = 0 : i64, scratch_operands = 0 : i64, tpu.core_type = #tpu.core_type<tc>, window_params = [{transform_indices = @transform_0, window_bounds = array<i64: 16, 200>}, {pipeline_mode = #tpu.pipeline_mode<synchronous>, transform_indices = @transform_1, window_bounds = array<i64: 200, 64>}, {pipeline_mode = #tpu.pipeline_mode<synchronous>, transform_indices = @transform_2, window_bounds = array<i64: 1, 64>}, {pipeline_mode = #tpu.pipeline_mode<synchronous>, transform_indices = @transform_3, window_bounds = array<i64: 64, 32>}, {pipeline_mode = #tpu.pipeline_mode<synchronous>, transform_indices = @transform_4, window_bounds = array<i64: 1, 32>}, {pipeline_mode = #tpu.pipeline_mode<synchronous>, transform_indices = @transform_5, window_bounds = array<i64: 1, 32>}, {pipeline_mode = #tpu.pipeline_mode<synchronous>, transform_indices = @transform_6, window_bounds = array<i64: 1, 1>}, {transform_indices = @transform_7, window_bounds = array<i64: 16, 1>}]} {
    %c0 = arith.constant 0 : index
    %c0_0 = arith.constant 0 : index
    %0 = vector.load %arg1[%c0, %c0_0] : memref<16x200xf32, #tpu.memory_space<vmem>>, vector<16x200xf32>
    %1 = arith.truncf %0 : vector<16x200xf32> to vector<16x200xbf16>
    %c0_1 = arith.constant 0 : index
    %c0_2 = arith.constant 0 : index
    %2 = vector.load %arg2[%c0_1, %c0_2] : memref<200x64xf32, #tpu.memory_space<vmem>>, vector<200x64xf32>
    %3 = arith.truncf %2 : vector<200x64xf32> to vector<200x64xbf16>
    %c0_3 = arith.constant 0 : index
    %c0_4 = arith.constant 0 : index
    %4 = vector.load %arg4[%c0_3, %c0_4] : memref<64x32xf32, #tpu.memory_space<vmem>>, vector<64x32xf32>
    %5 = arith.truncf %4 : vector<64x32xf32> to vector<64x32xbf16>
    %cst = arith.constant dense<0.000000e+00> : vector<16x64xf32>
    %6 = tpu.matmul %1, %3, %cst {dimension_numbers = #tpu.dot_dimension_numbers<[1], [0], [0], [1], [0, 0, 1, 1], [], []>} : vector<16x200xbf16>, vector<200x64xbf16>, vector<16x64xf32> -> vector<16x64xf32>
    %c0_5 = arith.constant 0 : index
    %c0_6 = arith.constant 0 : index
    %7 = vector.load %arg3[%c0_5, %c0_6] : memref<1x64xf32, #tpu.memory_space<vmem>>, vector<1x64xf32>
    %8 = vector.broadcast %7 : vector<1x64xf32> to vector<16x64xf32>
    %9 = arith.addf %6, %8 : vector<16x64xf32>
    %10 = math.absf %9 : vector<16x64xf32>
    %cst_7 = arith.constant 0.000000e+00 : f32
    %11 = vector.broadcast %cst_7 : f32 to vector<16x64xf32>
    %12 = arith.subf %11, %10 : vector<16x64xf32>
    %13 = math.exp %12 : vector<16x64xf32>
    %cst_8 = arith.constant 1.000000e+00 : f32
    %14 = vector.broadcast %cst_8 : f32 to vector<16x64xf32>
    %15 = arith.addf %14, %13 : vector<16x64xf32>
    %16 = tpu.reciprocal %15 {approx = true} : vector<16x64xf32> -> vector<16x64xf32>
    %cst_9 = arith.constant 0.000000e+00 : f32
    %17 = vector.broadcast %cst_9 : f32 to vector<16x64xf32>
    %18 = arith.cmpf oge, %9, %17 : vector<16x64xf32>
    %cst_10 = arith.constant 1.000000e+00 : f32
    %19 = vector.broadcast %cst_10 : f32 to vector<16x64xf32>
    %20 = arith.subf %19, %16 : vector<16x64xf32>
    %21 = arith.select %18, %16, %20 : vector<16x64xi1>, vector<16x64xf32>
    %22 = arith.truncf %21 : vector<16x64xf32> to vector<16x64xbf16>
    %cst_11 = arith.constant dense<0.000000e+00> : vector<16x32xf32>
    %23 = tpu.matmul %22, %5, %cst_11 {dimension_numbers = #tpu.dot_dimension_numbers<[1], [0], [0], [1], [0, 0, 1, 1], [], []>} : vector<16x64xbf16>, vector<64x32xbf16>, vector<16x32xf32> -> vector<16x32xf32>
    %c0_12 = arith.constant 0 : index
    %c0_13 = arith.constant 0 : index
    %24 = vector.load %arg5[%c0_12, %c0_13] : memref<1x32xf32, #tpu.memory_space<vmem>>, vector<1x32xf32>
    %25 = vector.broadcast %24 : vector<1x32xf32> to vector<16x32xf32>
    %26 = arith.addf %23, %25 : vector<16x32xf32>
    %27 = math.absf %26 : vector<16x32xf32>
    %cst_14 = arith.constant 0.000000e+00 : f32
    %28 = vector.broadcast %cst_14 : f32 to vector<16x32xf32>
    %29 = arith.subf %28, %27 : vector<16x32xf32>
    %30 = math.exp %29 : vector<16x32xf32>
    %cst_15 = arith.constant 1.000000e+00 : f32
    %31 = vector.broadcast %cst_15 : f32 to vector<16x32xf32>
    %32 = arith.addf %31, %30 : vector<16x32xf32>
    %33 = tpu.reciprocal %32 {approx = true} : vector<16x32xf32> -> vector<16x32xf32>
    %cst_16 = arith.constant 0.000000e+00 : f32
    %34 = vector.broadcast %cst_16 : f32 to vector<16x32xf32>
    %35 = arith.cmpf oge, %26, %34 : vector<16x32xf32>
    %cst_17 = arith.constant 1.000000e+00 : f32
    %36 = vector.broadcast %cst_17 : f32 to vector<16x32xf32>
    %37 = arith.subf %36, %33 : vector<16x32xf32>
    %38 = arith.select %35, %33, %37 : vector<16x32xi1>, vector<16x32xf32>
    %c0_18 = arith.constant 0 : index
    %c0_19 = arith.constant 0 : index
    %39 = vector.load %arg6[%c0_18, %c0_19] : memref<1x32xf32, #tpu.memory_space<vmem>>, vector<1x32xf32>
    %40 = vector.broadcast %39 : vector<1x32xf32> to vector<16x32xf32>
    %41 = arith.mulf %38, %40 : vector<16x32xf32>
    %cst_20 = arith.constant dense<0.000000e+00> : vector<16xf32>
    %42 = vector.multi_reduction <add>, %41, %cst_20 [1] : vector<16x32xf32> to vector<16xf32>
    %43 = vector.shape_cast %42 : vector<16xf32> to vector<16x1xf32>
    %c0_21 = arith.constant 0 : index
    %c0_22 = arith.constant 0 : index
    %44 = vector.load %arg7[%c0_21, %c0_22] : memref<1x1xf32, #tpu.memory_space<vmem>>, vector<1x1xf32>
    %45 = vector.broadcast %44 : vector<1x1xf32> to vector<16x1xf32>
    %46 = arith.addf %43, %45 : vector<16x1xf32>
    %47 = math.absf %46 : vector<16x1xf32>
    %cst_23 = arith.constant 0.000000e+00 : f32
    %48 = vector.broadcast %cst_23 : f32 to vector<16x1xf32>
    %49 = arith.subf %48, %47 : vector<16x1xf32>
    %50 = math.exp %49 : vector<16x1xf32>
    %cst_24 = arith.constant 1.000000e+00 : f32
    %51 = vector.broadcast %cst_24 : f32 to vector<16x1xf32>
    %52 = arith.addf %51, %50 : vector<16x1xf32>
    %53 = tpu.reciprocal %52 {approx = true} : vector<16x1xf32> -> vector<16x1xf32>
    %cst_25 = arith.constant 0.000000e+00 : f32
    %54 = vector.broadcast %cst_25 : f32 to vector<16x1xf32>
    %55 = arith.cmpf oge, %46, %54 : vector<16x1xf32>
    %cst_26 = arith.constant 1.000000e+00 : f32
    %56 = vector.broadcast %cst_26 : f32 to vector<16x1xf32>
    %57 = arith.subf %56, %53 : vector<16x1xf32>
    %58 = arith.select %55, %53, %57 : vector<16x1xi1>, vector<16x1xf32>
    %c0_27 = arith.constant 0 : index
    %c0_28 = arith.constant 0 : index
    %59 = vector.load %arg8[%c0_27, %c0_28] : memref<16x1xf32, #tpu.memory_space<vmem>>, vector<16x1xf32>
    tpu.vector_store %arg8[%c0_27, %c0_28], %58 {strides = array<i32>} : memref<16x1xf32, #tpu.memory_space<vmem>>, vector<16x1xf32>,
    return
  }
  func.func @transform_0(%arg0: i32) -> (i32, i32) {
    %c0_i32 = arith.constant 0 : i32
    %c0_i32_0 = arith.constant 0 : i32
    return %arg0, %c0_i32 : i32, i32
  }
  func.func @transform_1(%arg0: i32) -> (i32, i32) {
    %c0_i32 = arith.constant 0 : i32
    %c0_i32_0 = arith.constant 0 : i32
    %c0_i32_1 = arith.constant 0 : i32
    return %c0_i32, %c0_i32_0 : i32, i32
  }
  func.func @transform_2(%arg0: i32) -> (i32, i32) {
    %c0_i32 = arith.constant 0 : i32
    %c0_i32_0 = arith.constant 0 : i32
    %c0_i32_1 = arith.constant 0 : i32
    return %c0_i32, %c0_i32_0 : i32, i32
  }
  func.func @transform_3(%arg0: i32) -> (i32, i32) {
    %c0_i32 = arith.constant 0 : i32
    %c0_i32_0 = arith.constant 0 : i32
    %c0_i32_1 = arith.constant 0 : i32
    return %c0_i32, %c0_i32_0 : i32, i32
  }
  func.func @transform_4(%arg0: i32) -> (i32, i32) {
    %c0_i32 = arith.constant 0 : i32
    %c0_i32_0 = arith.constant 0 : i32
    %c0_i32_1 = arith.constant 0 : i32
    return %c0_i32, %c0_i32_0 : i32, i32
  }
  func.func @transform_5(%arg0: i32) -> (i32, i32) {
    %c0_i32 = arith.constant 0 : i32
    %c0_i32_0 = arith.constant 0 : i32
    %c0_i32_1 = arith.constant 0 : i32
    return %c0_i32, %c0_i32_0 : i32, i32
  }
  func.func @transform_6(%arg0: i32) -> (i32, i32) {
    %c0_i32 = arith.constant 0 : i32
    %c0_i32_0 = arith.constant 0 : i32
    %c0_i32_1 = arith.constant 0 : i32
    return %c0_i32, %c0_i32_0 : i32, i32
  }
  func.func @transform_7(%arg0: i32) -> (i32, i32) {
    %c0_i32 = arith.constant 0 : i32
    %c0_i32_0 = arith.constant 0 : i32
    return %arg0, %c0_i32 : i32, i32
  }
}

</mosaic_0001>

<bundles_post_ra>
// kernel: tpu_custom_call.1
= control target key start
LH: loop header
LB: loop body
LE: loop exit
PB: predicated region body
PF: predicated region fallthrough
CT: control target
= control target key end

     0   :  { %vm93_vm0 = vcmask 1043456   ;;  %vm89_vm1 = vcmask 588800   ;;  %vm148_vm4 = vcmask 523264   ;;  %vm190_vm6 = vcmask 261120   ;;  %s427_s1 = inlined_call_operand.vmem [shape: f32[200,64], index: 1, kind: input, shape index: {}]   ;;  %s428_s0 = inlined_call_operand.vmem [shape: f32[16,200], index: 0, kind: input, shape index: {}]   ;;  %s429_s2 = inlined_call_operand.vmem [shape: f32[1,64], index: 2, kind: input, shape index: {}]   ;;  %s430_s4 = inlined_call_operand.vmem [shape: f32[1,32], index: 4, kind: input, shape index: {}]   ;;  %s431_s3 = inlined_call_operand.vmem [shape: f32[64,32], index: 3, kind: input, shape index: {}]   ;;  %s432_s5 = inlined_call_operand.vmem [shape: f32[1,32], index: 5, kind: input, shape index: {}]   ;;  %s433_s6 = inlined_call_operand.<no memory space> [shape: f32[1,1], index: 6, kind: input, shape index: {}]   ;;  %s434_s7 = inlined_call_operand.vmem [shape: f32[16,1], index: 7, kind: output, shape index: {}]  }
   0x1   :  { %v49_v0 = vld [vmem:[%s427_s1 + $0x70] sm:$0xff]  ;;  %v50_v1 = vld [vmem:[%s427_s1 + $0x78] sm:$0xff]  ;;  %v47_v2 = vld [vmem:[%s427_s1 + $0x60] sm:$0xff]  ;;  %vm221_vm8 = vcmask 7168  }
   0x2   :  { %v67_v3 = vpack.c.bf16 %v50_v1, %v49_v0  ;;  %v48_v4 = vld [vmem:[%s427_s1 + $0x68] sm:$0xff]  ;;  %v59_v5 = vld [vmem:[%s427_s1 + $0xc0] sm:$0xff]  ;;  %v57_v7 = vld [vmem:[%s427_s1 + $0xb0] sm:$0xff] }
   0x3   :  { %v72_v6 = vpack.c.bf16 %v59_v5, %v59_v5  ;;  %v58_v8 = vld [vmem:[%s427_s1 + $0xb8] sm:$0xff]  ;;  %v66_v9 = vpack.c.bf16 %v48_v4, %v47_v2  ;;  %v45_v11 = vld [vmem:[%s427_s1 + $0x50] sm:$0xff]  ;;  %v55_v14 = vld [vmem:[%s427_s1 + $0xa0] sm:$0xff] }
   0x4   :  { %97 = vmatpush.bf16.msra.mxu0 %v67_v3  ;;  %v46_v12 = vld [vmem:[%s427_s1 + $0x58] sm:$0xff]  ;;  %v71_v13 = vpack.c.bf16 %v58_v8, %v57_v7  ;;  %v56_v15 = vld [vmem:[%s427_s1 + $0xa8] sm:$0xff]  ;;  %v43_v17 = vld [vmem:[%s427_s1 + $0x40] sm:$0xff] }
   0x5   :  { %v95_v10 = vsel %vm93_vm0, %v72_v6, 0  ;;  %v65_v16 = vpack.c.bf16 %v46_v12, %v45_v11  ;;  %v44_v18 = vld [vmem:[%s427_s1 + $0x48] sm:$0xff]  ;;  %v70_v19 = vpack.c.bf16 %v56_v15, %v55_v14  ;;  %v53_v20 = vld [vmem:[%s427_s1 + $0x90] sm:$0xff]  ;;  %v54_v21 = vld [vmem:[%s427_s1 + $0x98] sm:$0xff] }
   0x6   :  { %114 = vmatpush.bf16.msra.mxu1 %v95_v10  ;;  %v64_v22 = vpack.c.bf16 %v44_v18, %v43_v17  ;;  %v41_v23 = vld [vmem:[%s427_s1 + $0x30] sm:$0xff]  ;;  %v42_v24 = vld [vmem:[%s427_s1 + $0x38] sm:$0xff]  ;;  %v69_v25 = vpack.c.bf16 %v54_v21, %v53_v20  ;;  %v51_v26 = vld [vmem:[%s427_s1 + $0x80] sm:$0xff] }
   0x7   :  { %v52_v27 = vld [vmem:[%s427_s1 + $0x88] sm:$0xff]  ;;  %v63_v28 = vpack.c.bf16 %v42_v24, %v41_v23  ;;  %v39_v29 = vld [vmem:[%s427_s1 + $0x20] sm:$0xff]  ;;  %v32_v33 = vld [vmem:[%s428_s0 + $0x18] sm:$0xff] }
   0x8   :  { %98 = vmatpush.bf16.msra.mxu0 %v66_v9  ;;  %v40_v30 = vld [vmem:[%s427_s1 + $0x28] sm:$0xff]  ;;  %v68_v31 = vpack.c.bf16 %v52_v27, %v51_v26  ;;  %v37_v35 = vld [vmem:[%s427_s1 + $0x10] sm:$0xff]  ;;  %v38_v36 = vld [vmem:[%s427_s1 + $0x18] sm:$0xff] }
   0x9   :  { %v30_v32 = vld [vmem:[%s428_s0 + $0x8] sm:$0xff]  ;;  %v62_v34 = vpack.c.bf16 %v40_v30, %v39_v29  ;;  %v61_v38 = vpack.c.bf16 %v38_v36, %v37_v35  ;;  %v35_v39 = vld [vmem:[%s427_s1] sm:$0xff]  ;;  %v31_v43 = vld [vmem:[%s428_s0 + $0x10] sm:$0xff] }
   0xa   :  { %115 = vmatpush.bf16.msra.mxu1 %v71_v13  ;;  %v34_v37 = vpack.c.bf16 %v32_v33, %v30_v32  ;;  %v36_v40 = vld [vmem:[%s427_s1 + $0x8] sm:$0xff]  ;;  %v29_v42 = vld [vmem:[%s428_s0] sm:$0xff]  ;;  %v79_v45 = vld [vmem:[%s431_s3 + $0x30] sm:$0xff] }
   0xb   :  { %v60_v41 = vpack.c.bf16 %v36_v40, %v35_v39  ;;  %v33_v44 = vpack.c.bf16 %v31_v43, %v29_v42  ;;  %v80_v46 = vld [vmem:[%s431_s3 + $0x38] sm:$0xff]  ;;  %v77_v48 = vld [vmem:[%s431_s3 + $0x20] sm:$0xff]  ;;  %v78_v49 = vld [vmem:[%s431_s3 + $0x28] sm:$0xff] }
   0xc   :  { %99 = vmatpush.bf16.msra.mxu0 %v65_v16  ;;  %v84_v47 = vpack.c.bf16 %v80_v46, %v79_v45  ;;  %v83_v50 = vpack.c.bf16 %v78_v49, %v77_v48  ;;  %v75_v51 = vld [vmem:[%s431_s3 + $0x10] sm:$0xff]  ;;  %v76_v52 = vld [vmem:[%s431_s3 + $0x18] sm:$0xff]  ;;  %v230_v53 = vld [vmem:[%s429_s2] ss:$0 sm:$0xff] }
   0xd   :  { %v82_v54 = vpack.c.bf16 %v76_v52, %v75_v51  ;;  %v73_v55 = vld [vmem:[%s431_s3] sm:$0xff]  ;;  %v74_v56 = vld [vmem:[%s431_s3 + $0x8] sm:$0xff] }
   0xe   :  { %116 = vmatpush.bf16.msra.mxu1 %v70_v19  ;;  %156 = vmatpush.bf16.msra.mxu2 %v84_v47  ;;  %v81_v60 = vpack.c.bf16 %v74_v56, %v73_v55  ;;  %v231_v19 = vld [vmem:[%s430_s4] ss:$0 sm:$0xff] }
   0xf   :  { %v232_v36 = vld [vmem:[%s432_s5] ss:$0 sm:$0xff] }
  0x10   :  { %100 = vmatpush.bf16.msra.mxu0 %v64_v22 }
  0x12   :  { %117 = vmatpush.bf16.msra.mxu1 %v69_v25  ;;  %157 = vmatpush.bf16.msra.mxu2 %v83_v50  ;;  %v12_v25 = vstv %s433_s6 }
  0x13   :  { %13 = vst [vmem:[#allocation2] sm:$0x1] %v12_v25 }
  0x14   :  { %101 = vmatpush.bf16.msra.mxu0 %v63_v28 }
  0x16   :  { %118 = vmatpush.bf16.msra.mxu1 %v68_v31  ;;  %158 = vmatpush.bf16.msra.mxu2 %v82_v54 }
  0x18   :  { %102 = vmatpush.bf16.msra.mxu0 %v62_v34 }
  0x19   :  { %228 = vmatmul.msk.bf16.vlgmr.msra.gmra.mxu1 %vm89_vm1, %v34_v37 }
  0x1a   :  { %159 = vmatpush.bf16.msra.mxu2 %v81_v60  ;;  %v233_v46 = vld [vmem:[#allocation2] ss:$0 sm:$0xff] }
  0x1c   :  { %103 = vmatpush.bf16.msra.mxu0 %v61_v38 }
  0x20   :  { %104 = vmatpush.bf16.msra.mxu0 %v60_v41 }
  0x23   :  { %105 = vmatmul.bf16.vlgmr.msra.gmra.mxu0 %v33_v44 }
  0x96   :  { %v120_v57 = vpop.f32.mrf.mxu1 }
  0x9e   :  { %v122_v3 = vpop.f32.mrf.mxu1 }
  0xa0   :  { %v106_v58 = vpop.f32.mrf.mxu0 }
  0xa1   :  { %v107_v59 = vadd.f32 %v230_v53, %v106_v58 }
  0xa3   :  { %v121_v61 = vadd.f32 %v120_v57, %v107_v59 }
  0xa5   :  { %v125_v62 = vand.u32 2147483647, %v121_v61  ;;  %vm137_vm2 = vcmp.ge.f32.partialorder %v121_v61, 0.0 }
  0xa7   :  { %v127_v63 = vsub.f32 0.0, %v125_v62 }
  0xa8   :  { %v108_v0 = vpop.f32.mrf.mxu0 }
  0xa9   :  { %v129_v1 = vmul.f32 1.442695, %v127_v63  ;;  %v109_v2 = vadd.f32 %v230_v53, %v108_v0 }
  0xab   :  { %234 = vpow2.f32 %v129_v1  ;;  %v123_v4 = vadd.f32 %v122_v3, %v109_v2 }
  0xad   :  { %v126_v5 = vand.u32 2147483647, %v123_v4  ;;  %vm138_vm3 = vcmp.ge.f32.partialorder %v123_v4, 0.0 }
  0xaf   :  { %v128_v6 = vsub.f32 0.0, %v126_v5 }
  0xb1   :  { %v235_v7 = vpop.eup %234  ;;  %v131_v8 = vmul.f32 1.442695, %v128_v6 }
  0xb2   :  { %v133_v9 = vadd.f32 1.0, %v235_v7 }
  0xb3   :  { %236 = vpow2.f32 %v131_v8 }
  0xb4   :  { %238 = vrcp.f32 %v133_v9 }
  0xb9   :  { %v237_v10 = vpop.eup %236 }
  0xba   :  { %v134_v11 = vadd.f32 1.0, %v237_v10  ;;  %v239_v12 = vpop.eup %238 }
  0xbb   :  { %v139_v13 = vsub.f32 1.0, %v239_v12 }
  0xbc   :  { %240 = vrcp.f32 %v134_v11 }
  0xbd   :  { %v141_v16 = vsel %vm137_vm2, %v239_v12, %v139_v13 }
  0xc2   :  { %v241_v14 = vpop.eup %240 }
  0xc3   :  { %v140_v15 = vsub.f32 1.0, %v241_v14 }
  0xc5   :  { %v142_v17 = vsel %vm138_vm3, %v241_v14, %v140_v15 }
  0xc6   :  { %v143_v18 = vpack.c.bf16 %v142_v17, %v141_v16 }
  0xc8   :  { %229 = vmatmul.msk.bf16.vlgmr.msra.gmra.mxu2 %vm148_vm4, %v143_v18 }
 0x14b   :  { %v161_v20 = vpop.f32.mrf.mxu2 }
 0x14c   :  { %v162_v21 = vadd.f32 %v231_v19, %v161_v20 }
 0x14e   :  { %v166_v22 = vand.u32 2147483647, %v162_v21  ;;  %vm178_vm5 = vcmp.ge.f32.partialorder %v162_v21, 0.0 }
 0x150   :  { %v168_v23 = vsub.f32 0.0, %v166_v22 }
 0x152   :  { %v170_v24 = vmul.f32 1.442695, %v168_v23 }
 0x153   :  { %v163_v26 = vpop.f32.mrf.mxu2 }
 0x154   :  { %242 = vpow2.f32 %v170_v24  ;;  %v164_v27 = vadd.f32 %v231_v19, %v163_v26 }
 0x156   :  { %v167_v28 = vand.u32 2147483647, %v164_v27  ;;  %vm179_vm7 = vcmp.ge.f32.partialorder %v164_v27, 0.0 }
 0x158   :  { %v169_v29 = vsub.f32 0.0, %v167_v28 }
 0x15a   :  { %v243_v30 = vpop.eup %242  ;;  %v172_v31 = vmul.f32 1.442695, %v169_v29 }
 0x15b   :  { %v174_v32 = vadd.f32 1.0, %v243_v30 }
 0x15c   :  { %244 = vpow2.f32 %v172_v31 }
 0x15d   :  { %246 = vrcp.f32 %v174_v32 }
 0x162   :  { %v245_v33 = vpop.eup %244 }
 0x163   :  { %v247_v34 = vpop.eup %246  ;;  %v175_v35 = vadd.f32 1.0, %v245_v33 }
 0x164   :  { %v180_v37 = vsub.f32 1.0, %v247_v34 }
 0x165   :  { %248 = vrcp.f32 %v175_v35 }
 0x166   :  { %v182_v38 = vsel %vm178_vm5, %v247_v34, %v180_v37 }
 0x167   :  { %v188_v39 = vmul.f32 %v232_v36, %v182_v38 }
 0x169   :  { %v191_v40 = vsel %vm190_vm6, %v188_v39, 0.0 }
 0x16a   :  { %192 = vadd.xlane.f32.xlu0 %v191_v40 }
 0x16b   :  { %v249_v41 = vpop.eup %248 }
 0x16c   :  { %v181_v42 = vsub.f32 1.0, %v249_v41 }
 0x16e   :  { %v183_v43 = vsel %vm179_vm7, %v249_v41, %v181_v42 }
 0x16f   :  { %v189_v44 = vmul.f32 %v232_v36, %v183_v43 }
 0x171   :  { %v194_v45 = vsel %vm190_vm6, %v189_v44, 0.0 }
 0x172   :  { %195 = vadd.xlane.f32.xlu0 %v194_v45 }
 0x1dd   :  { %v193_v47 = vpop.xlane.xlu0 %192 }
 0x1de   :  { %v201_v48 = vadd.f32 %v233_v46, %v193_v47 }
 0x1e0   :  { %v203_v49 = vand.u32 2147483647, %v201_v48  ;;  %vm215_vm9 = vcmp.ge.f32.partialorder %v201_v48, 0.0 }
 0x1e2   :  { %v205_v50 = vsub.f32 0.0, %v203_v49 }
 0x1e4   :  { %v207_v51 = vmul.f32 1.442695, %v205_v50 }
 0x1e5   :  { %v196_v52 = vpop.xlane.xlu0 %195 }
 0x1e6   :  { %250 = vpow2.f32 %v207_v51  ;;  %v202_v53 = vadd.f32 %v233_v46, %v196_v52 }
 0x1e8   :  { %v204_v54 = vand.u32 2147483647, %v202_v53  ;;  %vm216_vm10 = vcmp.ge.f32.partialorder %v202_v53, 0.0 }
 0x1ea   :  { %v206_v55 = vsub.f32 0.0, %v204_v54 }
 0x1ec   :  { %v251_v56 = vpop.eup %250  ;;  %v209_v57 = vmul.f32 1.442695, %v206_v55 }
 0x1ed   :  { %v211_v58 = vadd.f32 1.0, %v251_v56 }
 0x1ee   :  { %252 = vpow2.f32 %v209_v57 }
 0x1ef   :  { %254 = vrcp.f32 %v211_v58 }
 0x1f4   :  { %v253_v59 = vpop.eup %252 }
 0x1f5   :  { %v255_v60 = vpop.eup %254  ;;  %v212_v61 = vadd.f32 1.0, %v253_v59 }
 0x1f6   :  { %v217_v62 = vsub.f32 1.0, %v255_v60 }
 0x1f7   :  { %256 = vrcp.f32 %v212_v61 }
 0x1f8   :  { %v219_v63 = vsel %vm215_vm9, %v255_v60, %v217_v62 }
 0x1f9   :  { %222 = vst.msk [vmem:[%s434_s7] sm:$0xff] %vm221_vm8, %v219_v63 }
 0x1fd   :  { %v257_v0 = vpop.eup %256 }
 0x1fe   :  { %v218_v1 = vsub.f32 1.0, %v257_v0 }
 0x200   :  { %v220_v2 = vsel %vm216_vm10, %v257_v0, %v218_v1 }
 0x201   :  { %223 = vst.msk [vmem:[%s434_s7 + $0x8] sm:$0xff] %vm221_vm8, %v220_v2 }

</bundles_post_ra>
